<compile_context>
chip_gen: v6e
topology: v6e:2x2x1
jax: 0.10.0
libtpu: 0.0.40
codegen_flags: <defaults>
</compile_context>

<pallas_src>
import jax
import jax.numpy as jnp
from jax.experimental import pallas as pl
from jax.experimental.pallas import tpu as pltpu


def _sobelxy_kernel(x_ref, above_ref, below_ref, o_ref):
    # x_ref:     (1, 1, TH, W)  current row-strip of the image
    # above_ref: (1, 1, 1, W)   row just above the strip (zeros at image top)
    # below_ref: (1, 1, 1, W)   row just below the strip (zeros at image bottom)
    # o_ref:     (1, 1, TH, W)
    TH = o_ref.shape[2]
    W = o_ref.shape[3]
    f32 = jnp.float32

    strip = x_ref[0, 0].astype(f32)        # (TH, W)
    top = above_ref[0, 0].astype(f32)      # (1, W)
    bot = below_ref[0, 0].astype(f32)      # (1, W)

    # Horizontal (separable) pass: hd = x[.,j+1] - x[.,j-1]
    #                              hs = x[.,j-1] + 2 x[.,j] + x[.,j+1]
    # Lane rotations run on the XLU; out-of-image neighbours are zeroed to
    # reproduce conv2d's padding=1 (only the two edge columns are touched).
    def hpass(rows):                       # rows: (R, W)
        R = rows.shape[0]
        cols = jax.lax.broadcasted_iota(jnp.int32, (R, W), 1)
        left = jnp.where(cols == 0, 0.0, pltpu.roll(rows, 1, axis=1))        # x[., j-1]
        right = jnp.where(cols == W - 1, 0.0, pltpu.roll(rows, W - 1, axis=1))  # x[., j+1]
        return right - left, left + 2.0 * rows + right

    hd, hs = hpass(strip)                  # (TH, W)
    top_hd, top_hs = hpass(top)            # (1, W)
    bot_hd, bot_hs = hpass(bot)            # (1, W)

    # Vertical combine: Gx[r] = hd[r-1] + 2 hd[r] + hd[r+1]
    #                   Gy[r] = hs[r-1] - hs[r+1]
    # Sublane rotations + O(W) edge patches from the 1-row halos; no
    # strip-sized concatenates or tile-crossing slices.
    rows_i = jax.lax.broadcasted_iota(jnp.int32, (TH, W), 0)
    hd_up = jnp.where(rows_i == 0, top_hd, pltpu.roll(hd, 1, axis=0))
    hd_dn = jnp.where(rows_i == TH - 1, bot_hd, pltpu.roll(hd, TH - 1, axis=0))
    hs_up = jnp.where(rows_i == 0, top_hs, pltpu.roll(hs, 1, axis=0))
    hs_dn = jnp.where(rows_i == TH - 1, bot_hs, pltpu.roll(hs, TH - 1, axis=0))

    gx = hd_up + 2.0 * hd + hd_dn
    gy = hs_up - hs_dn
    o_ref[0, 0] = (jnp.abs(gx) + jnp.abs(gy)).astype(o_ref.dtype)


def _round_up(x, m):
    return -(-x // m) * m


def _pick_strip_rows(H, W, itemsize, target_bytes, min_strips=4):
    """Multiple-of-8 strip height: <= target_bytes per strip, and >= 2 (ideally
    min_strips) strips per image whenever H allows it (megacore + pipelining)."""
    h8 = _round_up(max(H, 1), 8)
    row_bytes = max(1, W * itemsize)
    th = (target_bytes // row_bytes) // 8 * 8
    th = int(max(8, min(h8, th)))
    want = min(min_strips, h8 // 8)
    if want >= 2:
        th = int(max(8, min(th, (h8 // want) // 8 * 8)))
    return th


def sobelxy(x, *, strip_rows=None, strip_bytes_target=2 << 20):
    """x: (N, 1, H, W) float array -> (N, 1, H, W); matches SobelXY.forward."""
    assert x.ndim == 4 and x.shape[1] == 1, "SobelXY weights are single-channel"
    N, _, H, W = x.shape
    itemsize = jnp.dtype(x.dtype).itemsize

    # Lane-dense output blocks: pad W up to a multiple of 128 when needed.
    W_pad = W if W % 128 == 0 else _round_up(W, 128)

    if strip_rows is not None:
        assert strip_rows % 8 == 0 or strip_rows == H, \
            "strip_rows must be a multiple of 8 (or equal to H)"
        TH = strip_rows
    else:
        TH = _pick_strip_rows(H, W_pad, itemsize, strip_bytes_target)
    H_pad = _round_up(H, TH)
    nS = H_pad // TH

    # Zero padding matches conv2d's padding=1 semantics at the true image
    # border, so the result sliced back to (H, W) is exact.  Only materialized
    # when the shape actually needs it.
    x_work = x
    if (H_pad, W_pad) != (H, W):
        x_work = jnp.pad(x, ((0, 0), (0, 0), (0, H_pad - H), (0, W_pad - W)))

    # Per-strip vertical halo rows (1 row above / 1 row below each strip,
    # zeros at the image top / bottom):  tiny (N, nS, 1, W) tables, fetched one
    # row per grid step, instead of a full padded image copy.
    xhw = x_work[:, 0]                                           # (N, H_pad, W_pad)
    zero_row = jnp.zeros((N, 1, W_pad), x.dtype)
    above = jnp.concatenate([zero_row, xhw[:, TH - 1:H_pad - 1:TH, :]], axis=1)
    below = jnp.concatenate([xhw[:, TH:H_pad:TH, :], zero_row], axis=1)
    above = above[:, :, None, :]                                 # (N, nS, 1, W_pad)
    below = below[:, :, None, :]

    # VMEM budget: 2x double-buffered in-strip + 2x out-strip + in-kernel f32
    # temps.  Keep well under v7x's 64 MiB physical VMEM; explicitly raise the
    # scoped limit (v5e default is only 16 MiB).
    strip_f32_bytes = TH * W_pad * 4
    vmem_limit = int(min(64 << 20, max(32 << 20, 20 * strip_f32_bytes)))

    grid_spec = pl.GridSpec(
        grid=(N, nS),
        in_specs=[
            # Input row-strip.  (On v7x, sweeping pipeline_mode=pl.Buffered(3)
            # here is a cheap follow-up once compute per strip shrinks.)
            pl.BlockSpec((1, 1, TH, W_pad), lambda n, i: (n, 0, i, 0)),
            # One halo row above / below the current strip.
            pl.BlockSpec((1, 1, 1, W_pad), lambda n, i: (n, i, 0, 0)),
            pl.BlockSpec((1, 1, 1, W_pad), lambda n, i: (n, i, 0, 0)),
        ],
        out_specs=pl.BlockSpec((1, 1, TH, W_pad), lambda n, i: (n, 0, i, 0)),
    )

    out = pl.pallas_call(
        _sobelxy_kernel,
        out_shape=jax.ShapeDtypeStruct((N, 1, H_pad, W_pad), x.dtype),
        grid_spec=grid_spec,
        compiler_params=pltpu.CompilerParams(
            dimension_semantics=("parallel", "parallel"),
            vmem_limit_bytes=vmem_limit),
    )(x_work, above, below)

    if (H_pad, W_pad) != (H, W):
        out = out[:, :, :H, :W]
    return out


def _sobelxy_ref(x):
    """Pure-JAX reference (mirrors F.conv2d cross-correlation + abs + add)."""
    kx = jnp.array([[-1., 0., 1.], [-2., 0., 2.], [-1., 0., 1.]], jnp.float32)
    ky = jnp.array([[1., 2., 1.], [0., 0., 0.], [-1., -2., -1.]], jnp.float32)
    w_x = kx[None, None]
    w_y = ky[None, None]
    dn = jax.lax.conv_dimension_numbers(x.shape, w_x.shape, ("NCHW", "OIHW", "NCHW"))
    xf = x.astype(jnp.float32)
    sx = jax.lax.conv_general_dilated(xf, w_x, (1, 1), ((1, 1), (1, 1)),
                                      dimension_numbers=dn)
    sy = jax.lax.conv_general_dilated(xf, w_y, (1, 1), ((1, 1), (1, 1)),
                                      dimension_numbers=dn)
    return (jnp.abs(sx) + jnp.abs(sy)).astype(x.dtype)


if __name__ == "__main__":
    key = jax.random.PRNGKey(0)

    # Small NCHW single-channel input (the module's weights are (1,1,3,3)).
    # W=16 exercises the lane-padding path; H=16 still gives 2 row-strips.
    x = jax.random.normal(key, (2, 1, 16, 16), dtype=jnp.float32)
    out = jax.block_until_ready(sobelxy(x))
    ref = jax.block_until_ready(_sobelxy_ref(x))
    assert out.shape == x.shape
    assert jnp.allclose(out, ref, atol=1e-4, rtol=1e-4)

    # Lane-aligned size, several row-strips, no padding path, forced strip size.
    x2 = jax.random.normal(jax.random.PRNGKey(1), (1, 1, 128, 256), dtype=jnp.float32)
    out2 = jax.block_until_ready(sobelxy(x2, strip_rows=32))
    assert jnp.allclose(out2, _sobelxy_ref(x2), atol=1e-4, rtol=1e-4)

    print("KERNEL_OK")
</pallas_src>

<mosaic_0001>
module attributes {stable_mosaic.version = 11 : i64} {
  func.func @_sobelxy_kernel(%arg0: i32, %arg1: i32, %arg2: memref<1x1x8x128xf32, #tpu.memory_space<vmem>>, %arg3: memref<1x1x1x128xf32, #tpu.memory_space<vmem>>, %arg4: memref<1x1x1x128xf32, #tpu.memory_space<vmem>>, %arg5: memref<1x1x8x128xf32, #tpu.memory_space<vmem>>) attributes {dimension_semantics = [#tpu.dimension_semantics<parallel>, #tpu.dimension_semantics<parallel>], iteration_bounds = array<i64: 2, 2>, scalar_prefetch = 0 : i64, scratch_operands = 0 : i64, tpu.core_type = #tpu.core_type<tc>, window_params = [{transform_indices = @transform_0, window_bounds = array<i64: 1, 1, 8, 128>}, {transform_indices = @transform_1, window_bounds = array<i64: 1, 1, 1, 128>}, {transform_indices = @transform_2, window_bounds = array<i64: 1, 1, 1, 128>}, {transform_indices = @transform_3, window_bounds = array<i64: 1, 1, 8, 128>}]} {
    %c0 = arith.constant 0 : index
    %c0_0 = arith.constant 0 : index
    %c0_1 = arith.constant 0 : index
    %c0_2 = arith.constant 0 : index
    %0 = vector.load %arg2[%c0, %c0_0, %c0_1, %c0_2] : memref<1x1x8x128xf32, #tpu.memory_space<vmem>>, vector<1x1x8x128xf32>
    %1 = vector.shape_cast %0 : vector<1x1x8x128xf32> to vector<8x128xf32>
    %c0_3 = arith.constant 0 : index
    %c0_4 = arith.constant 0 : index
    %c0_5 = arith.constant 0 : index
    %c0_6 = arith.constant 0 : index
    %2 = vector.load %arg3[%c0_3, %c0_4, %c0_5, %c0_6] : memref<1x1x1x128xf32, #tpu.memory_space<vmem>>, vector<1x1x1x128xf32>
    %3 = vector.shape_cast %2 : vector<1x1x1x128xf32> to vector<1x128xf32>
    %c0_7 = arith.constant 0 : index
    %c0_8 = arith.constant 0 : index
    %c0_9 = arith.constant 0 : index
    %c0_10 = arith.constant 0 : index
    %4 = vector.load %arg4[%c0_7, %c0_8, %c0_9, %c0_10] : memref<1x1x1x128xf32, #tpu.memory_space<vmem>>, vector<1x1x1x128xf32>
    %5 = vector.shape_cast %4 : vector<1x1x1x128xf32> to vector<1x128xf32>
    %6 = tpu.iota {dimensions = array<i32: 1>} : vector<8x128xi32>
    %c0_i32 = arith.constant 0 : i32
    %7 = vector.broadcast %c0_i32 : i32 to vector<8x128xi32>
    %8 = arith.cmpi eq, %6, %7 : vector<8x128xi32>
    %c1_i32 = arith.constant 1 : i32
    %9 = tpu.dynamic_rotate %1 by %c1_i32 dim 1 : vector<8x128xf32>, i32 -> vector<8x128xf32>
    %cst = arith.constant 0.000000e+00 : f32
    %10 = vector.broadcast %cst : f32 to vector<8x128xf32>
    %11 = arith.select %8, %10, %9 : vector<8x128xi1>, vector<8x128xf32>
    %c127_i32 = arith.constant 127 : i32
    %12 = vector.broadcast %c127_i32 : i32 to vector<8x128xi32>
    %13 = arith.cmpi eq, %6, %12 : vector<8x128xi32>
    %c127_i32_11 = arith.constant 127 : i32
    %14 = tpu.dynamic_rotate %1 by %c127_i32_11 dim 1 : vector<8x128xf32>, i32 -> vector<8x128xf32>
    %cst_12 = arith.constant 0.000000e+00 : f32
    %15 = vector.broadcast %cst_12 : f32 to vector<8x128xf32>
    %16 = arith.select %13, %15, %14 : vector<8x128xi1>, vector<8x128xf32>
    %17 = arith.subf %16, %11 : vector<8x128xf32>
    %cst_13 = arith.constant 2.000000e+00 : f32
    %18 = vector.broadcast %cst_13 : f32 to vector<8x128xf32>
    %19 = arith.mulf %18, %1 : vector<8x128xf32>
    %20 = arith.addf %11, %19 : vector<8x128xf32>
    %21 = arith.addf %20, %16 : vector<8x128xf32>
    %22 = tpu.iota {dimensions = array<i32: 1>} : vector<1x128xi32>
    %c0_i32_14 = arith.constant 0 : i32
    %23 = vector.broadcast %c0_i32_14 : i32 to vector<1x128xi32>
    %24 = arith.cmpi eq, %22, %23 : vector<1x128xi32>
    %c1_i32_15 = arith.constant 1 : i32
    %25 = tpu.dynamic_rotate %3 by %c1_i32_15 dim 1 : vector<1x128xf32>, i32 -> vector<1x128xf32>
    %cst_16 = arith.constant 0.000000e+00 : f32
    %26 = vector.broadcast %cst_16 : f32 to vector<1x128xf32>
    %27 = arith.select %24, %26, %25 : vector<1x128xi1>, vector<1x128xf32>
    %c127_i32_17 = arith.constant 127 : i32
    %28 = vector.broadcast %c127_i32_17 : i32 to vector<1x128xi32>
    %29 = arith.cmpi eq, %22, %28 : vector<1x128xi32>
    %c127_i32_18 = arith.constant 127 : i32
    %30 = tpu.dynamic_rotate %3 by %c127_i32_18 dim 1 : vector<1x128xf32>, i32 -> vector<1x128xf32>
    %cst_19 = arith.constant 0.000000e+00 : f32
    %31 = vector.broadcast %cst_19 : f32 to vector<1x128xf32>
    %32 = arith.select %29, %31, %30 : vector<1x128xi1>, vector<1x128xf32>
    %33 = arith.subf %32, %27 : vector<1x128xf32>
    %cst_20 = arith.constant 2.000000e+00 : f32
    %34 = vector.broadcast %cst_20 : f32 to vector<1x128xf32>
    %35 = arith.mulf %34, %3 : vector<1x128xf32>
    %36 = arith.addf %27, %35 : vector<1x128xf32>
    %37 = arith.addf %36, %32 : vector<1x128xf32>
    %38 = tpu.iota {dimensions = array<i32: 1>} : vector<1x128xi32>
    %c0_i32_21 = arith.constant 0 : i32
    %39 = vector.broadcast %c0_i32_21 : i32 to vector<1x128xi32>
    %40 = arith.cmpi eq, %38, %39 : vector<1x128xi32>
    %c1_i32_22 = arith.constant 1 : i32
    %41 = tpu.dynamic_rotate %5 by %c1_i32_22 dim 1 : vector<1x128xf32>, i32 -> vector<1x128xf32>
    %cst_23 = arith.constant 0.000000e+00 : f32
    %42 = vector.broadcast %cst_23 : f32 to vector<1x128xf32>
    %43 = arith.select %40, %42, %41 : vector<1x128xi1>, vector<1x128xf32>
    %c127_i32_24 = arith.constant 127 : i32
    %44 = vector.broadcast %c127_i32_24 : i32 to vector<1x128xi32>
    %45 = arith.cmpi eq, %38, %44 : vector<1x128xi32>
    %c127_i32_25 = arith.constant 127 : i32
    %46 = tpu.dynamic_rotate %5 by %c127_i32_25 dim 1 : vector<1x128xf32>, i32 -> vector<1x128xf32>
    %cst_26 = arith.constant 0.000000e+00 : f32
    %47 = vector.broadcast %cst_26 : f32 to vector<1x128xf32>
    %48 = arith.select %45, %47, %46 : vector<1x128xi1>, vector<1x128xf32>
    %49 = arith.subf %48, %43 : vector<1x128xf32>
    %cst_27 = arith.constant 2.000000e+00 : f32
    %50 = vector.broadcast %cst_27 : f32 to vector<1x128xf32>
    %51 = arith.mulf %50, %5 : vector<1x128xf32>
    %52 = arith.addf %43, %51 : vector<1x128xf32>
    %53 = arith.addf %52, %48 : vector<1x128xf32>
    %54 = tpu.iota {dimensions = array<i32: 0>} : vector<8x128xi32>
    %c0_i32_28 = arith.constant 0 : i32
    %55 = vector.broadcast %c0_i32_28 : i32 to vector<8x128xi32>
    %56 = arith.cmpi eq, %54, %55 : vector<8x128xi32>
    %c1_i32_29 = arith.constant 1 : i32
    %57 = tpu.dynamic_rotate %17 by %c1_i32_29 dim 0 : vector<8x128xf32>, i32 -> vector<8x128xf32>
    %58 = vector.shape_cast %33 : vector<1x128xf32> to vector<1x128xf32>
    %59 = vector.broadcast %58 : vector<1x128xf32> to vector<8x128xf32>
    %60 = arith.select %56, %59, %57 : vector<8x128xi1>, vector<8x128xf32>
    %c7_i32 = arith.constant 7 : i32
    %61 = vector.broadcast %c7_i32 : i32 to vector<8x128xi32>
    %62 = arith.cmpi eq, %54, %61 : vector<8x128xi32>
    %c7_i32_30 = arith.constant 7 : i32
    %63 = tpu.dynamic_rotate %17 by %c7_i32_30 dim 0 : vector<8x128xf32>, i32 -> vector<8x128xf32>
    %64 = vector.shape_cast %49 : vector<1x128xf32> to vector<1x128xf32>
    %65 = vector.broadcast %64 : vector<1x128xf32> to vector<8x128xf32>
    %66 = arith.select %62, %65, %63 : vector<8x128xi1>, vector<8x128xf32>
    %c0_i32_31 = arith.constant 0 : i32
    %67 = vector.broadcast %c0_i32_31 : i32 to vector<8x128xi32>
    %68 = arith.cmpi eq, %54, %67 : vector<8x128xi32>
    %c1_i32_32 = arith.constant 1 : i32
    %69 = tpu.dynamic_rotate %21 by %c1_i32_32 dim 0 : vector<8x128xf32>, i32 -> vector<8x128xf32>
    %70 = vector.shape_cast %37 : vector<1x128xf32> to vector<1x128xf32>
    %71 = vector.broadcast %70 : vector<1x128xf32> to vector<8x128xf32>
    %72 = arith.select %68, %71, %69 : vector<8x128xi1>, vector<8x128xf32>
    %c7_i32_33 = arith.constant 7 : i32
    %73 = vector.broadcast %c7_i32_33 : i32 to vector<8x128xi32>
    %74 = arith.cmpi eq, %54, %73 : vector<8x128xi32>
    %c7_i32_34 = arith.constant 7 : i32
    %75 = tpu.dynamic_rotate %21 by %c7_i32_34 dim 0 : vector<8x128xf32>, i32 -> vector<8x128xf32>
    %76 = vector.shape_cast %53 : vector<1x128xf32> to vector<1x128xf32>
    %77 = vector.broadcast %76 : vector<1x128xf32> to vector<8x128xf32>
    %78 = arith.select %74, %77, %75 : vector<8x128xi1>, vector<8x128xf32>
    %cst_35 = arith.constant 2.000000e+00 : f32
    %79 = vector.broadcast %cst_35 : f32 to vector<8x128xf32>
    %80 = arith.mulf %79, %17 : vector<8x128xf32>
    %81 = arith.addf %60, %80 : vector<8x128xf32>
    %82 = arith.addf %81, %66 : vector<8x128xf32>
    %83 = arith.subf %72, %78 : vector<8x128xf32>
    %84 = math.absf %82 : vector<8x128xf32>
    %85 = math.absf %83 : vector<8x128xf32>
    %86 = arith.addf %84, %85 : vector<8x128xf32>
    %c0_36 = arith.constant 0 : index
    %c0_37 = arith.constant 0 : index
    %c0_38 = arith.constant 0 : index
    %c0_39 = arith.constant 0 : index
    %87 = vector.load %arg5[%c0_36, %c0_37, %c0_38, %c0_39] : memref<1x1x8x128xf32, #tpu.memory_space<vmem>>, vector<1x1x8x128xf32>
    %88 = vector.shape_cast %87 : vector<1x1x8x128xf32> to vector<8x128xf32>
    %89 = vector.shape_cast %86 : vector<8x128xf32> to vector<1x1x8x128xf32>
    tpu.vector_store %arg5[%c0_36, %c0_37, %c0_38, %c0_39], %89 {strides = array<i32>} : memref<1x1x8x128xf32, #tpu.memory_space<vmem>>, vector<1x1x8x128xf32>,
    return
  }
  func.func @transform_0(%arg0: i32, %arg1: i32) -> (i32, i32, i32, i32) {
    %c0_i32 = arith.constant 0 : i32
    %c0_i32_0 = arith.constant 0 : i32
    %c0_i32_1 = arith.constant 0 : i32
    return %arg0, %c0_i32, %arg1, %c0_i32_0 : i32, i32, i32, i32
  }
  func.func @transform_1(%arg0: i32, %arg1: i32) -> (i32, i32, i32, i32) {
    %c0_i32 = arith.constant 0 : i32
    %c0_i32_0 = arith.constant 0 : i32
    %c0_i32_1 = arith.constant 0 : i32
    return %arg0, %arg1, %c0_i32, %c0_i32_0 : i32, i32, i32, i32
  }
  func.func @transform_2(%arg0: i32, %arg1: i32) -> (i32, i32, i32, i32) {
    %c0_i32 = arith.constant 0 : i32
    %c0_i32_0 = arith.constant 0 : i32
    %c0_i32_1 = arith.constant 0 : i32
    return %arg0, %arg1, %c0_i32, %c0_i32_0 : i32, i32, i32, i32
  }
  func.func @transform_3(%arg0: i32, %arg1: i32) -> (i32, i32, i32, i32) {
    %c0_i32 = arith.constant 0 : i32
    %c0_i32_0 = arith.constant 0 : i32
    %c0_i32_1 = arith.constant 0 : i32
    return %arg0, %c0_i32, %arg1, %c0_i32_0 : i32, i32, i32, i32
  }
}

</mosaic_0001>

<bundles_post_ra>
// kernel: tpu_custom_call.1
= control target key start
LH: loop header
LB: loop body
LE: loop exit
PB: predicated region body
PF: predicated region fallthrough
CT: control target
= control target key end

     0   :  { %s1029_s0 = inlined_call_operand.hbm [shape: f32[2,1,16,128], index: 0, kind: input, shape index: {}]   ;;  %s1030_s1 = inlined_call_operand.hbm [shape: f32[2,2,1,128], index: 1, kind: input, shape index: {}]   ;;  %s1031_s2 = inlined_call_operand.hbm [shape: f32[2,2,1,128], index: 2, kind: input, shape index: {}]   ;;  %s1032_s3 = inlined_call_operand.hbm [shape: f32[2,1,16,128], index: 3, kind: output, shape index: {}]  }
   0x1   :  { %1038 = sst [smem:[#allocation17_spill]] %s1030_s1 }
   0x2   :  { %1039 = sst [smem:[#allocation18_spill]] %s1031_s2 }
   0x3   :  { %8 = vsyncpa [#allocation3], 0 }
   0x4   :  { %10 = vsyncpa [#allocation3 + $0x1], 0 }
   0x5   :  { %11 = vsyncpa [#allocation6], 0 }
   0x6   :  { %13 = vsyncpa [#allocation6 + $0x1], 0 }
   0x7   :  { %14 = vsyncpa [#allocation4], 0 }
   0x8   :  { %16 = vsyncpa [#allocation4 + $0x1], 0  ;;  %s813_s12 = smov 0   ;;  %s815_s13 = smov 0  }
   0x9   :  { %s817_s14 = smov 0   ;;  %s819_s15 = smov 0  }
   0xa   :  { %s821_s16 = smov 0   ;;  %s823_s17 = smov 0  }
   0xb   :  { %s825_s18 = smov 0   ;;  %s827_s19 = smov 0  }
   0xc LB: > { %1040 = sst [smem:[#allocation12_spill]] %s777_s17  ;;  %s854_s20 = sadd.s32 4294967295, %s785_s19   ;;  %s785_s19 = sphi %s827_s19, %s22_s19   ;;  %s781_s18 = sphi %s825_s18, %s1059_s18   ;;  %s777_s17 = sphi %s823_s17, %s1058_s17   ;;  %s773_s16 = sphi %s821_s16, %s1057_s16   ;;  %s769_s15 = sphi %s819_s15, %s1056_s15   ;;  %s765_s14 = sphi %s817_s14, %s1062_s14   ;;  %s761_s13 = sphi %s815_s13, %s1061_s13   ;;  %s757_s12 = sphi %s813_s12, %s1060_s12  }
   0xd   : > { %1041 = sst [smem:[#allocation13_spill]] %s781_s18  ;;  %s493_s21 = sadd.s32 4294967294, %s785_s19  }
   0xe   : > { %s31_s22 = sadd.s32 1, %s777_s17  ;;  %s34_s23 = sadd.s32 1, %s781_s18 }
   0xf   : > { %p32_p0 = scmp.ge.s32.totalorder %s31_s22, 2  ;;  %s43_s24 = sadd.s32 1, %s765_s14 }
  0x10   : > { %p50_p1 = scmp.ne.s32.totalorder %s765_s14, %s761_s13  ;;  %p51_p2 = scmp.eq.s32.totalorder %s785_s19, 0 }
  0x11   : > { %s1064_s22 = smov (%p32_p0, %s31_s22), 0  ;;  %s1066_s23 = smov (!%p32_p0, %s34_s23), %s781_s18 }
  0x12   : > { %1042 = sst [smem:[#allocation14_spill]] %s1064_s22  ;;  %s39_s25 = ssub.s32 %s777_s17, %s1064_s22 }
  0x13   : > { %p868_p3 = por %p51_p2, %p50_p1  ;;  %p36_p4 = scmp.ge.s32.totalorder %s1066_s23, 2 }
  0x14   : > { %p56_p5 = scmp.ne.s32.totalorder %s761_s13, %s757_s12  ;;  %p57_p6 = scmp.eq.s32.totalorder %s854_s20, 0 }
  0x15   : > { %p138_p7 = scmp.eq.s32.totalorder %s854_s20, 3  ;;  %s1068_s23 = smov (%p36_p4, %s1066_s23), 0 }
  0x16   : > { %1044 = sst [smem:[#allocation15_spill]] %s1068_s23  ;;  %p878_p8 = por %p57_p6, %p56_p5 }
  0x17   : > { %p882_p9 = por %p138_p7, %p50_p1  ;;  %s38_s29 = ssub.s32 %s781_s18, %s1068_s23 }
  0x18   : > { %p144_p10 = scmp.eq.s32.totalorder %s493_s21, 3  ;;  %s40_s30 = sor.u32 %s39_s25, %s38_s29 }
  0x19   : > { %s1046_s28 = scalar_select %p882_p9, 1, 0 }
  0x1a   : > { %p41_p11 = scmp.eq.s32.totalorder %s40_s30, 0  ;;  %p888_p12 = por %p144_p10, %p56_p5 }
  0x1b   : > { %p533_p13 = scmp.lt.s32.totalorder %s785_s19, 4  ;;  %s894_s5 = sand.u32 1, %s765_s14  }
  0x1c   : > { %s1047_s4 = scalar_select %p888_p12, 1, 0 }
  0x1d   : > { %s897_s6 = scalar_select %p41_p11, %s765_s14, %s43_s24  }
  0x1e   : > { %s497_s7 = sshll.u32 %s781_s18, 1  ;;  %p902_p0 = pnand %p533_p13, %p868_p3 }
  0x1f   : > { %1048 = sst [smem:[#allocation16_spill]] %s897_s6  ;;  %s907_s9 = sadd.s32 %s777_s17, %s497_s7 }
  0x20   : > { %s184_s10 = sand.u32 1, %s785_s19   ;;  %s500_s11 = sshll.u32 %s907_s9, 4 }
  0x21   : > { %s1050_s1 = sld [smem:[#allocation17_spill]]  ;;  %s187_s30 = scalar_lea.vmem [#allocation5], %s894_s5 }
  0x22   : > { %s196_s24 = sshll.u32 %s187_s30, 4  ;;  %s1051_s2 = sld [smem:[#allocation18_spill]]  ;;  %s197_s24 = int_to_ptr.vmem [resolvable:$true] %s196_s24 }
  0x23   : > { %s920_s18 = scalar_lea.sflag [#allocation6], %s184_s10  ;;  %p603_p1 = pneg %p902_p0 }
  0x24   : > { %s614_s7 = scalar_lea.vmem %s197_s24, 16  ;;  %s787_s21 = smov [#allocation5]  }
  0x25   : > { %p615_p2 = scmp.ne.s32.totalorder %s197_s24, %s614_s7  ;;  %s619_s25 = sshll.u32 %s787_s21, 4  ;;  %s620_s25 = int_to_ptr.vmem [resolvable:$false] %s619_s25 }
  0x26   : > { %s621_s30 = scalar_lea.vmem %s620_s25, 32  ;;  %p622_p5 = scmp.lt.s32.totalorder %s197_s24, %s620_s25 }
  0x27   : > { %s194_s29 = scalar_lea.hbm %s1050_s1, %s500_s11  ;;  %p617_p3 = pnand %p615_p2, %p603_p1 }
  0x28   : > { %s918_s22 = scalar_lea.hbm %s1051_s2, %s500_s11  ;;  %p623_p6 = scmp.lt.s32.totalorder %s621_s30, %s614_s7 }
  0x29   : > { %p618_p4 = pneg %p617_p3 }
  0x2a   : > { %p624_p7 = por %p623_p6, %p622_p5 }
  0x2c   : > { %p625_p10 = pnand %p624_p7, %p618_p4 }
  0x2e   : > { %628 = shalt.err (!%p625_p10)
}
  0x2f   : > { %525 = dma.hbm_to_vmem [thread:$0]  (!%p902_p0), %s194_s29, 16, %s197_s24, %s920_s18  }
  0x30   : > { %p503_p11 = scmp.ge.s32.totalorder %s785_s19, 1  ;;  %p220_p13 = scmp.lt.s32.totalorder %s785_s19, 5 }
  0x31   : > { %s496_s10 = sshll.u32 %s894_s5, 3  ;;  %s498_s11 = sshll.u32 %s907_s9, 7 }
  0x32   : > { %p932_p2 = pnand %p503_p11, %p220_p13  ;;  %s175_s21 = scalar_lea.hbm %s1029_s0, %s498_s11 }
  0x33   : > { %s168_s25 = scalar_lea.vmem [#allocation2], %s496_s10  ;;  %s206_s1 = scalar_lea.vmem [#allocation7], %s894_s5 }
  0x34   : > { %s177_s30 = sshll.u32 %s168_s25, 4  ;;  %s215_s2 = sshll.u32 %s206_s1, 4  ;;  %s178_s30 = int_to_ptr.vmem [resolvable:$true] %s177_s30  ;;  %s216_s2 = int_to_ptr.vmem [resolvable:$true] %s215_s2 }
  0x35   : > { %s165_s17 = scalar_lea.sflag [#allocation3], %s894_s5  ;;  %s642_s6 = scalar_lea.vmem %s178_s30, 128 }
  0x36   : > { %p643_p3 = scmp.ne.s32.totalorder %s178_s30, %s642_s6  ;;  %s788_s29 = smov [#allocation2]  }
  0x37   : > { %s647_s24 = sshll.u32 %s788_s29, 4  ;;  %s648_s24 = int_to_ptr.vmem [resolvable:$false] %s647_s24 }
  0x38   : > { %p645_p4 = pnand %p643_p3, %p603_p1  ;;  %s649_s9 = scalar_lea.vmem %s648_s24, 256 }
  0x39   : > { %p650_p6 = scmp.lt.s32.totalorder %s178_s30, %s648_s24  ;;  %p651_p7 = scmp.lt.s32.totalorder %s649_s9, %s642_s6 }
  0x3a   : > { %p646_p5 = pneg %p645_p4 }
  0x3b   : > { %p652_p10 = por %p651_p7, %p650_p6 }
  0x3d   : > { %p653_p11 = pnand %p652_p10, %p646_p5 }
  0x3f   : > { %656 = shalt.err (!%p653_p11)
}
  0x40   : > { %522 = dma.hbm_to_vmem [thread:$0]  (!%p902_p0), %s175_s21, 128, %s178_s30, %s165_s17  }
  0x41   : > { %s670_s1 = scalar_lea.vmem %s216_s2, 16  ;;  %s789_s5 = smov [#allocation7]  }
  0x42   : > { %p671_p13 = scmp.ne.s32.totalorder %s216_s2, %s670_s1  ;;  %s675_s10 = sshll.u32 %s789_s5, 4  ;;  %s676_s10 = int_to_ptr.vmem [resolvable:$false] %s675_s10 }
  0x43   : > { %s677_s11 = scalar_lea.vmem %s676_s10, 32  ;;  %p678_p12 = scmp.lt.s32.totalorder %s216_s2, %s676_s10 }
  0x44   : > { %p673_p3 = pnand %p671_p13, %p603_p1  ;;  %p679_p9 = scmp.lt.s32.totalorder %s677_s11, %s670_s1 }
  0x46   : > { %p674_p4 = pneg %p673_p3  ;;  %p680_p6 = por %p679_p9, %p678_p12 }
  0x48   : > { %p681_p5 = pnand %p680_p6, %p674_p4 }
  0x4a   : > { %684 = shalt.err (!%p681_p5)
}
  0x4b   : > { %528 = dma.hbm_to_vmem [thread:$0]  (!%p902_p0), %s918_s22, 16, %s216_s2, %s920_s18  }
  0x4c   : > { %224 = sbr.rel (%p932_p2) target bundleno = 237 (0xed), region = 32  ;;  %s958_s17 = sand.u32 (!%p932_p2), 1, %s761_s13  }
  0x4d   : > { %s504_s6 = sshll.u32 (!%p932_p2), %s958_s17, 3  ;;  %s227_s26 = scalar_lea.sflag (!%p932_p2), [#allocation3], %s958_s17 }
  0x4e   : > { %s230_s7 = scalar_lea.vmem (!%p932_p2), [#allocation2], %s504_s6 }
  0x51   : > { %744 = dma.done.wait (%p878_p8), %s227_s26, 128  }
  0x52   : > { %746 = vsyncadd (%p878_p8), %s227_s26, 4294967168  ;;  %s235_s2 = sand.u32 1, %s854_s20   ;;  %s238_s22 = scalar_lea.vmem [#allocation5], %s958_s17 }
  0x53   : > { %s236_s18 = scalar_lea.sflag [#allocation6], %s235_s2 }
  0x54   : > { %748 = dma.done.wait (%p878_p8), %s236_s18, 32  }
  0x55   : > { %750 = vsyncadd (%p878_p8), %s236_s18, 4294967264  ;;  %v278_v0 = vld [vmem:[%s238_s22] sm:$0x1]  ;;  %s790_s8 = smov 1   ;;  %s791_s23 = smov 127   ;;  %v280_v3 = vlaneseq }
  0x56   : > { %v277_v1 = vld [vmem:[%s230_s7] sm:$0xff]  ;;  %294 = vrot.lane.b32.xlu1 %v278_v0, %s790_s8  ;;  %s246_s21 = scalar_lea.vmem [#allocation7], %s958_s17  ;;  %v301_v5 = vmul.f32 2.0, %v278_v0  ;;  %s507_s20 = sshll.u32 %s773_s16, 1 }
  0x57   : > { %283 = vrot.lane.b32.xlu0 %v277_v1, %s790_s8  ;;  %v279_v2 = vld [vmem:[%s246_s21] sm:$0x1]  ;;  %v281_v4 = vand.u32 127, %v280_v3  ;;  %v315_v6 = vshrl.u32 %v280_v3, 7  ;;  %v291_v9 = vmul.f32 2.0, %v277_v1  ;;  %s362_s27 = sadd.s32 %s769_s15, %s507_s20  ;;  %s276_s30 = scalar_lea.vmem [#allocation8], %s504_s6 }
  0x58   : > { %v311_v23 = vmul.f32 2.0, %v279_v2  ;;  %s508_s25 = sshll.u32 %s362_s27, 7  ;;  %s366_s29 = sshll.u32 %s276_s30, 4  ;;  %s367_s29 = int_to_ptr.vmem [resolvable:$true] %s366_s29 }
  0x59   : > { %vm282_vm0 = vcmp.eq.s32.totalorder %v281_v4, 0  ;;  %vm286_vm1 = vcmp.eq.s32.totalorder %v281_v4, 127  ;;  %v320_v14 = vsub.s32 0, %v315_v6  ;;  %vm316_vm2 = vcmp.eq.s32.totalorder %v315_v6, 0  ;;  %s364_s16 = scalar_lea.hbm %s1032_s3, %s508_s25  ;;  %s351_s1 = scalar_lea.sflag [#allocation4], %s958_s17 }
  0x5a   : > { %297 = vrot.lane.b32.xlu1 %v278_v0, %s791_s23  ;;  %vm323_vm3 = vcmp.eq.s32.totalorder %v315_v6, 7  ;;  %s685_s5 = scalar_lea.vmem %s367_s29, 128  ;;  %p1053_p9 = scmp.ne.s32.totalorder %s1046_s28, 0 }
  0x5b   : > { %287 = vrot.lane.b32.xlu0 %v277_v1, %s791_s23  ;;  %p686_p8 = scmp.ne.s32.totalorder %s367_s29, %s685_s5  ;;  %s792_s15 = smov [#allocation8]  }
  0x5c   : > { %s689_s10 = sshll.u32 %s792_s15, 4  ;;  %s690_s10 = int_to_ptr.vmem [resolvable:$false] %s689_s10 }
  0x5d   : > { %p687_p12 = pnand %p686_p8, %p1053_p9  ;;  %s691_s11 = scalar_lea.vmem %s690_s10, 256 }
  0x5e   : > { %307 = vrot.lane.b32.xlu1 %v279_v2, %s791_s23  ;;  %p692_p1 = scmp.lt.s32.totalorder %s367_s29, %s690_s10  ;;  %p693_p2 = scmp.lt.s32.totalorder %s691_s11, %s685_s5 }
  0x5f   : > { %304 = vrot.lane.b32.xlu0 %v279_v2, %s790_s8  ;;  %p688_p0 = pneg %p687_p12 }
  0x60   : > { %p694_p7 = por %p693_p2, %p692_p1 }
  0x62   : > { %p695_p10 = pnand %p694_p7, %p688_p0 }
  0xc8   : > { %v295_v7 = vpop.permute.xlu1 %294 }
  0xc9   : > { %v284_v8 = vpop.permute.xlu0 %283  ;;  %v296_v10 = vsel %vm282_vm0, 0.0, %v295_v7 }
  0xca   : > { %v285_v11 = vsel %vm282_vm0, 0.0, %v284_v8  ;;  %v302_v12 = vadd.f32 %v301_v5, %v296_v10 }
  0xcb   : > { %v292_v13 = vadd.f32 %v291_v9, %v285_v11 }
  0xcc   : > { %v298_v15 = vpop.permute.xlu1 %297 }
  0xcd   : > { %v288_v16 = vpop.permute.xlu0 %287  ;;  %v299_v17 = vsel %vm286_vm1, 0.0, %v298_v15 }
  0xce   : > { %v289_v18 = vsel %vm286_vm1, 0.0, %v288_v16  ;;  %v300_v19 = vsub.f32 %v299_v17, %v296_v10  ;;  %v303_v20 = vadd.f32 %v302_v12, %v299_v17 }
  0xcf   : > { %v290_v21 = vsub.f32 %v289_v18, %v285_v11  ;;  %v293_v22 = vadd.f32 %v292_v13, %v289_v18 }
  0xd0   : > { %v321_v24 = vrot.slane %v300_v19, %v320_v14  ;;  %v334_v25 = vrot.slane %v303_v20, %v320_v14  ;;  %v308_v27 = vpop.permute.xlu1 %307 }
  0xd1   : > { %v317_v26 = vrot.slane %v290_v21, 7  ;;  %v305_v28 = vpop.permute.xlu0 %304  ;;  %v330_v29 = vrot.slane %v293_v22, 7  ;;  %v309_v30 = vsel %vm286_vm1, 0.0, %v308_v27  ;;  %v342_v31 = vmul.f32 2.0, %v290_v21 }
  0xd2   : > { %v306_v32 = vsel %vm282_vm0, 0.0, %v305_v28  ;;  %v324_v37 = vrot.slane %v290_v21, 1  ;;  %v336_v41 = vrot.slane %v293_v22, 1 }
  0xd3   : > { %v322_v33 = vsel %vm316_vm2, %v321_v24, %v317_v26  ;;  %v335_v34 = vsel %vm316_vm2, %v334_v25, %v330_v29  ;;  %v310_v35 = vsub.f32 %v309_v30, %v306_v32  ;;  %v312_v36 = vadd.f32 %v311_v23, %v306_v32 }
  0xd4   : > { %v343_v40 = vadd.f32 %v342_v31, %v322_v33 }
  0xd5   : > { %v313_v38 = vadd.f32 %v312_v36, %v309_v30  ;;  %v328_v39 = vrot.slane %v310_v35, %v320_v14 }
  0xd7   : > { %v329_v42 = vsel %vm323_vm3, %v328_v39, %v324_v37  ;;  %v340_v43 = vrot.slane %v313_v38, %v320_v14 }
  0xd8   : > { %v344_v44 = vadd.f32 %v343_v40, %v329_v42 }
  0xd9   : > { %v341_v45 = vsel %vm323_vm3, %v340_v43, %v336_v41 }
  0xda   : > { %v345_v46 = vsub.f32 %v335_v34, %v341_v45  ;;  %v346_v47 = vand.u32 2147483647, %v344_v44 }
  0xdc   : > { %v347_v48 = vand.u32 2147483647, %v345_v46 }
  0xde   : > { %v348_v49 = vadd.f32 %v347_v48, %v346_v47 }
  0xe0   : > { %349 = vst [vmem:[%s276_s30] sm:$0xff] %v348_v49 }
  0xe1   : > { %698 = shalt.err (!%p695_p10)
}
  0xe2   : > { %s699_s6 = scalar_lea.hbm %s364_s16, 128  ;;  %s703_s7 = scalar_lea.hbm %s1032_s3, 512 }
  0xe3   : > { %p700_p11 = scmp.ne.s32.totalorder %s364_s16, %s699_s6  ;;  %p704_p4 = scmp.lt.s32.totalorder %s364_s16, %s1032_s3 }
  0xe4   : > { %p705_p6 = scmp.lt.s32.totalorder %s703_s7, %s699_s6 }
  0xe5   : > { %p701_p13 = pnand %p700_p11, %p1053_p9 }
  0xe6   : > { %p706_p5 = por %p705_p6, %p704_p4 }
  0xe7   : > { %p702_p3 = pneg %p701_p13 }
  0xe9   : > { %p707_p8 = pnand %p706_p5, %p702_p3 }
  0xeb   : > { %710 = shalt.err (!%p707_p8)
}
  0xec   : > { %517 = dma.vmem_to_hbm [thread:$0]  (%p1053_p9), %s367_s29, 128, %s364_s16, %s351_s1  }
  0xed PF: > { %p534_p12 = scmp.ge.s32.totalorder %s785_s19, 2  ;;  %s378_s22 = sand.u32 1, %s757_s12  }
  0xee   : > { %p1054_p0 = scmp.ne.s32.totalorder %s1047_s4, 0  ;;  %s379_s8 = scalar_lea.sflag [#allocation4], %s378_s22 }
  0xf0   : > { %p530_p1 = pnand %p534_p12, %p1054_p0 }
  0xf2   : > { %p531_p2 = pneg %p530_p1 }
  0xf4   : > { %752 = dma.done.wait (%p531_p2), %s379_s8, 128  }
  0xf5   : > { %754 = vsyncadd (%p531_p2), %s379_s8, 4294967168  ;;  %s22_s19 = sadd.s32 1, %s785_s19   ;;  %s1055_s23 = sld [smem:[#allocation16_spill]] }
  0xf6   : > { %p19_p7 = scmp.ge.s32.totalorder %s22_s19, 6   ;;  %s1056_s15 = sld [smem:[#allocation12_spill]] }
  0xf7   : > { %s1057_s16 = sld [smem:[#allocation13_spill]]  ;;  %s1060_s12 = smov %s761_s13 }
  0xf8   : > { %s1058_s17 = sld [smem:[#allocation14_spill]]  ;;  %s1061_s13 = smov %s765_s14 }
  0xf9   : > { %s1059_s18 = sld [smem:[#allocation15_spill]]  ;;  %21 = sbr.rel (!%p19_p7) target bundleno = 12 (0xc), region = 101 }
  0xfb   : > { %s1062_s14 = smov %s1055_s23 }
  0xfe   :  { %384 = vsyncpa [#allocation3], 1 }
  0xff   :  { %386 = vsyncpa [#allocation3 + $0x1], 1 }
 0x100   :  { %387 = vsyncpa [#allocation6], 1 }
 0x101   :  { %389 = vsyncpa [#allocation6 + $0x1], 1 }
 0x102   :  { %390 = vsyncpa [#allocation4], 1 }
 0x103   :  { %392 = vsyncpa [#allocation4 + $0x1], 1 }

</bundles_post_ra>
